<compile_context>
chip_gen: v5e
topology: v5e:2x2
jax: 0.10.0
libtpu: 0.0.40
codegen_flags: <defaults>
</compile_context>

<pallas_src>
import functools

import jax
import jax.numpy as jnp
from jax.experimental import pallas as pl
from jax.experimental.pallas import tpu as pltpu


def autopad(k, p=None):
    if p is None:
        p = k // 2 if isinstance(k, int) else [x // 2 for x in k]
    return p


def _round_up(x, m):
    return (x + m - 1) // m * m


def _cdiv(a, b):
    return (a + b - 1) // b


# ----------------------------- Pallas kernel --------------------------------
def _conv_bn_silu_kernel(x_ref, xh_ref, w_ref, scale_ref, shift_ref, o_ref,
                         patch_ref, *, k, wp, c1, mt):
    """Fused stride-1 conv + folded-BN affine + SiLU for one (n, C2-tile, M-tile).

      x_ref:     (C1, MT)      bf16  flat-spatial main block (lanes = flat HW)
      xh_ref:    (C1, HB)      bf16  halo block immediately after the main block
      w_ref:     (TC2, k*k*C1) bf16  flattened weights (BN scale NOT folded)
      scale_ref: (TC2, 1)      f32   gamma / sqrt(var + eps)
      shift_ref: (TC2, 1)      f32   beta - mean * scale
      o_ref:     (TC2, MT)     bf16  lane-dense output tile (flat spatial)
      patch_ref: (k*k*C1, MT)  bf16  VMEM scratch: concatenated-tap operand
    """
    # One gather pass: build the concatenated-tap operand.  All slice offsets
    # are Python ints (static), so no dynamic lane-offset loads are emitted.
    for kk in range(k * k):
        d = (kk // k) * wp + (kk % k)          # flat shift of this tap
        r0 = kk * c1
        if d == 0:
            patch_ref[r0:r0 + c1, :] = x_ref[...]
        else:
            if d < mt:
                patch_ref[r0:r0 + c1, :mt - d] = x_ref[:, d:]
            patch_ref[r0:r0 + c1, mt - d:] = xh_ref[:, :d]

    # Single MXU matmul, contraction K = k*k*C1, f32 accumulation.
    acc = jnp.dot(w_ref[...], patch_ref[...],
                  preferred_element_type=jnp.float32)

    # Folded-BN affine + SiLU in f32 (VPU + EUP), cast at the store.
    z = acc * scale_ref[...] + shift_ref[...]
    o_ref[...] = (z * jax.nn.sigmoid(z)).astype(o_ref.dtype)


# ------------------------------- wrapper -------------------------------------
def conv_module_forward(x, weight, gamma, beta, running_mean, running_var,
                        *, k, s, p, eps=1e-5, out_dtype=jnp.bfloat16,
                        mt_target=4096, tc2_max=256):
    """Conv -> BatchNorm2d (eval) -> SiLU.  x: (N, C1, H, W) f32.  Returns NCHW."""
    N, C1, H, W = x.shape
    C2 = weight.shape[0]
    assert s == 1, "only stride 1 implemented"  # TODO(synk): stride > 1 path
    Wp = W + 2 * p
    Ho = (H + 2 * p - k) // s + 1
    Wo = (W + 2 * p - k) // s + 1

    # Fold BN (inference) into per-channel scale/shift; applied in f32 in the
    # kernel epilogue (NOT folded into the bf16 weights -> no range blowup).
    scale = (gamma / jnp.sqrt(running_var + eps)).astype(jnp.float32)
    shift = (beta - running_mean * scale).astype(jnp.float32)

    # ------------------------------- tiling ---------------------------------
    c1p = _round_up(C1, 16)            # bf16 sublane tile; aligns tap groups
    kkc1 = k * k * c1p
    if C2 <= tc2_max:
        tc2 = _round_up(C2, 16)
        c2p = tc2
    else:
        tc2 = tc2_max                  # NOTE: 128 is the better pick on v5e
        c2p = _round_up(C2, tc2)

    d_max = (k - 1) * Wp + (k - 1)     # largest flat tap shift
    hb = _round_up(d_max, 128)         # lane-aligned halo block width
    m_valid = Ho * Wp                  # flat positions consumed downstream
    full = _round_up(m_valid, hb)
    if full <= mt_target:
        mt, num_m = full, 1
    else:
        mt = max(hb, mt_target // hb * hb)   # multiple of hb (and of 128)
        num_m = _cdiv(m_valid, mt)
    m_out = num_m * mt
    mx_need = m_out + hb               # flat extent the kernel may read

    # -------- input prep: cast FIRST, then a single pad pass; reshape free ---
    xb = x.astype(jnp.bfloat16)
    rows_need = _cdiv(mx_need, Wp)
    pad_bottom = max(p, rows_need - (H + p))
    xb = jnp.pad(xb, ((0, 0), (0, c1p - C1), (p, pad_bottom), (p, p)))
    hx = H + p + pad_bottom
    x_flat = xb.reshape(N, c1p, hx * Wp)      # contiguous merge -> no copy

    # (C2, C1, kh, kw) -> (c2p, k*k*c1p); tap-major / channel-minor columns so
    # they line up with the patch scratch rows.  bf16, unscaled.
    w_pad = jnp.pad(weight, ((0, c2p - C2), (0, c1p - C1), (0, 0), (0, 0)))
    w_flat = jnp.transpose(w_pad, (0, 2, 3, 1)).reshape(c2p, kkc1)
    w_flat = w_flat.astype(jnp.bfloat16)

    scale_col = jnp.pad(scale, (0, c2p - C2)).reshape(c2p, 1)
    shift_col = jnp.pad(shift, (0, c2p - C2)).reshape(c2p, 1)

    kernel = functools.partial(_conv_bn_silu_kernel, k=k, wp=Wp, c1=c1p, mt=mt)

    out_bytes = jnp.dtype(out_dtype).itemsize
    flops = 2 * N * c2p * m_out * kkc1
    bytes_accessed = (N * (c2p // tc2) * (m_out + num_m * hb) * c1p * 2
                      + N * c2p * kkc1 * 2 + 2 * c2p * 4
                      + N * c2p * m_out * out_bytes)

    hbs = mt // hb                      # halo blocks per M tile (exact)
    out_flat = pl.pallas_call(
        kernel,
        out_shape=jax.ShapeDtypeStruct((N, c2p, m_out), out_dtype),
        grid_spec=pltpu.PrefetchScalarGridSpec(
            num_scalar_prefetch=0,
            # m fastest: weights/scale/shift stay VMEM-resident across M tiles.
            grid=(N, c2p // tc2, num_m),
            in_specs=[
                pl.BlockSpec((None, c1p, mt), lambda n, j, m: (n, 0, m)),
                pl.BlockSpec((None, c1p, hb),
                             lambda n, j, m: (n, 0, (m + 1) * hbs)),
                pl.BlockSpec((tc2, kkc1), lambda n, j, m: (j, 0)),
                pl.BlockSpec((tc2, 1), lambda n, j, m: (j, 0)),
                pl.BlockSpec((tc2, 1), lambda n, j, m: (j, 0)),
            ],
            out_specs=pl.BlockSpec((None, tc2, mt), lambda n, j, m: (n, j, m)),
            scratch_shapes=[pltpu.VMEM((kkc1, mt), jnp.bfloat16)],
        ),
        compiler_params=pltpu.CompilerParams(
            dimension_semantics=("parallel", "parallel", "parallel"),
            vmem_limit_bytes=32 * 1024 * 1024,   # v7x-safe; v6e could go higher
        ),
        cost_estimate=pl.CostEstimate(
            flops=flops,
            transcendentals=N * c2p * m_out,
            bytes_accessed=bytes_accessed,
        ),
    )(x_flat, x_flat, w_flat, scale_col, shift_col)

    # Drop channel padding, garbage flat rows, and wrap-around columns.  The
    # kernel already produces NCHW-ordered data.
    # TODO(synk): let a downstream fused kernel consume the padded
    # (c2p, Ho, Wp)-flat layout directly and skip this repack pass.
    out = out_flat[:, :C2, :m_valid].reshape(N, C2, Ho, Wp)[:, :, :, :Wo]
    return out


def conv_module_reference(x, weight, gamma, beta, running_mean, running_var,
                          *, k, s, p, eps=1e-5):
    """Pure-JAX f32 reference (lax.conv) for the correctness check."""
    y = jax.lax.conv_general_dilated(
        x, weight, window_strides=(s, s),
        padding=((p, p), (p, p)),
        dimension_numbers=("NCHW", "OIHW", "NCHW"),
    )
    scale = (gamma / jnp.sqrt(running_var + eps)).reshape(1, -1, 1, 1)
    shift = (beta - running_mean * gamma / jnp.sqrt(running_var + eps)).reshape(1, -1, 1, 1)
    z = y * scale + shift
    return z * jax.nn.sigmoid(z)


if __name__ == "__main__":
    # Conv(c1=4, c2=8, k=3, s=1) -> autopad(3) = 1, groups=1, bias=False.
    N, C1, H, W = 2, 4, 16, 16
    C2, K, S = 8, 3, 1
    P = autopad(K)

    key = jax.random.PRNGKey(0)
    kx, kw, kg, kb = jax.random.split(key, 4)

    x = jax.random.normal(kx, (N, C1, H, W), dtype=jnp.float32)
    weight = jax.random.normal(kw, (C2, C1, K, K), dtype=jnp.float32) * 0.1
    gamma = 1.0 + 0.1 * jax.random.normal(kg, (C2,), dtype=jnp.float32)
    beta = 0.1 * jax.random.normal(kb, (C2,), dtype=jnp.float32)
    # BatchNorm running stats at PyTorch defaults (inference-mode semantics).
    running_mean = jnp.zeros((C2,), dtype=jnp.float32)
    running_var = jnp.ones((C2,), dtype=jnp.float32)

    out = conv_module_forward(x, weight, gamma, beta, running_mean, running_var,
                              k=K, s=S, p=P)
    out = jax.block_until_ready(out)

    ref = conv_module_reference(x, weight, gamma, beta, running_mean, running_var,
                                k=K, s=S, p=P)
    ref = jax.block_until_ready(ref)

    assert out.shape == (N, C2, H, W), out.shape
    # bf16 operands + bf16 output (f32 accumulation) -> loosened tolerance.
    err = float(jnp.max(jnp.abs(out.astype(jnp.float32) - ref)))
    assert err < 5e-2, f"max abs error too large: {err}"

    print("KERNEL_OK")
</pallas_src>

<mosaic_0001>
module attributes {stable_mosaic.version = 11 : i64} {
  func.func @_conv_bn_silu_kernel(%arg0: i32, %arg1: i32, %arg2: i32, %arg3: memref<1x16x384xbf16, #tpu.memory_space<vmem>>, %arg4: memref<1x16x128xbf16, #tpu.memory_space<vmem>>, %arg5: memref<16x144xbf16, #tpu.memory_space<vmem>>, %arg6: memref<16x1xf32, #tpu.memory_space<vmem>>, %arg7: memref<16x1xf32, #tpu.memory_space<vmem>>, %arg8: memref<1x16x384xbf16, #tpu.memory_space<vmem>>, %arg9: memref<144x384xbf16, #tpu.memory_space<vmem>>) attributes {dimension_semantics = [#tpu.dimension_semantics<parallel>, #tpu.dimension_semantics<parallel>, #tpu.dimension_semantics<parallel>], iteration_bounds = array<i64: 2, 1, 1>, scalar_prefetch = 0 : i64, scratch_operands = 1 : i64, tpu.core_type = #tpu.core_type<tc>, window_params = [{transform_indices = @transform_0, window_bounds = array<i64: 1, 16, 384>}, {transform_indices = @transform_1, window_bounds = array<i64: 1, 16, 128>}, {transform_indices = @transform_2, window_bounds = array<i64: 16, 144>}, {transform_indices = @transform_3, window_bounds = array<i64: 16, 1>}, {transform_indices = @transform_4, window_bounds = array<i64: 16, 1>}, {transform_indices = @transform_5, window_bounds = array<i64: 1, 16, 384>}]} {
    %c0 = arith.constant 0 : index
    %c0_0 = arith.constant 0 : index
    %c0_1 = arith.constant 0 : index
    %0 = vector.load %arg3[%c0, %c0_0, %c0_1] : memref<1x16x384xbf16, #tpu.memory_space<vmem>>, vector<1x16x384xbf16>
    %1 = vector.shape_cast %0 : vector<1x16x384xbf16> to vector<16x384xbf16>
    %c0_2 = arith.constant 0 : index
    %c0_3 = arith.constant 0 : index
    %2 = vector.load %arg9[%c0_2, %c0_3] : memref<144x384xbf16, #tpu.memory_space<vmem>>, vector<16x384xbf16>
    tpu.vector_store %arg9[%c0_2, %c0_3], %1 {strides = array<i32>} : memref<144x384xbf16, #tpu.memory_space<vmem>>, vector<16x384xbf16>,
    %c0_4 = arith.constant 0 : index
    %c0_5 = arith.constant 0 : index
    %c1 = arith.constant 1 : index
    %3 = vector.load %arg3[%c0_4, %c0_5, %c1] : memref<1x16x384xbf16, #tpu.memory_space<vmem>>, vector<1x16x383xbf16>
    %4 = vector.shape_cast %3 : vector<1x16x383xbf16> to vector<16x383xbf16>
    %c16 = arith.constant 16 : index
    %c0_6 = arith.constant 0 : index
    %5 = vector.load %arg9[%c16, %c0_6] : memref<144x384xbf16, #tpu.memory_space<vmem>>, vector<16x383xbf16>
    tpu.vector_store %arg9[%c16, %c0_6], %4 {strides = array<i32>} : memref<144x384xbf16, #tpu.memory_space<vmem>>, vector<16x383xbf16>,
    %c0_7 = arith.constant 0 : index
    %c0_8 = arith.constant 0 : index
    %c0_9 = arith.constant 0 : index
    %6 = vector.load %arg4[%c0_7, %c0_8, %c0_9] : memref<1x16x128xbf16, #tpu.memory_space<vmem>>, vector<1x16x1xbf16>
    %7 = vector.shape_cast %6 : vector<1x16x1xbf16> to vector<16x1xbf16>
    %c16_10 = arith.constant 16 : index
    %c383 = arith.constant 383 : index
    %8 = vector.load %arg9[%c16_10, %c383] : memref<144x384xbf16, #tpu.memory_space<vmem>>, vector<16x1xbf16>
    tpu.vector_store %arg9[%c16_10, %c383], %7 {strides = array<i32>} : memref<144x384xbf16, #tpu.memory_space<vmem>>, vector<16x1xbf16>,
    %c0_11 = arith.constant 0 : index
    %c0_12 = arith.constant 0 : index
    %c2 = arith.constant 2 : index
    %9 = vector.load %arg3[%c0_11, %c0_12, %c2] : memref<1x16x384xbf16, #tpu.memory_space<vmem>>, vector<1x16x382xbf16>
    %10 = vector.shape_cast %9 : vector<1x16x382xbf16> to vector<16x382xbf16>
    %c32 = arith.constant 32 : index
    %c0_13 = arith.constant 0 : index
    %11 = vector.load %arg9[%c32, %c0_13] : memref<144x384xbf16, #tpu.memory_space<vmem>>, vector<16x382xbf16>
    tpu.vector_store %arg9[%c32, %c0_13], %10 {strides = array<i32>} : memref<144x384xbf16, #tpu.memory_space<vmem>>, vector<16x382xbf16>,
    %c0_14 = arith.constant 0 : index
    %c0_15 = arith.constant 0 : index
    %c0_16 = arith.constant 0 : index
    %12 = vector.load %arg4[%c0_14, %c0_15, %c0_16] : memref<1x16x128xbf16, #tpu.memory_space<vmem>>, vector<1x16x2xbf16>
    %13 = vector.shape_cast %12 : vector<1x16x2xbf16> to vector<16x2xbf16>
    %c32_17 = arith.constant 32 : index
    %c382 = arith.constant 382 : index
    %14 = vector.load %arg9[%c32_17, %c382] : memref<144x384xbf16, #tpu.memory_space<vmem>>, vector<16x2xbf16>
    tpu.vector_store %arg9[%c32_17, %c382], %13 {strides = array<i32>} : memref<144x384xbf16, #tpu.memory_space<vmem>>, vector<16x2xbf16>,
    %c0_18 = arith.constant 0 : index
    %c0_19 = arith.constant 0 : index
    %c18 = arith.constant 18 : index
    %15 = vector.load %arg3[%c0_18, %c0_19, %c18] : memref<1x16x384xbf16, #tpu.memory_space<vmem>>, vector<1x16x366xbf16>
    %16 = vector.shape_cast %15 : vector<1x16x366xbf16> to vector<16x366xbf16>
    %c48 = arith.constant 48 : index
    %c0_20 = arith.constant 0 : index
    %17 = vector.load %arg9[%c48, %c0_20] : memref<144x384xbf16, #tpu.memory_space<vmem>>, vector<16x366xbf16>
    tpu.vector_store %arg9[%c48, %c0_20], %16 {strides = array<i32>} : memref<144x384xbf16, #tpu.memory_space<vmem>>, vector<16x366xbf16>,
    %c0_21 = arith.constant 0 : index
    %c0_22 = arith.constant 0 : index
    %c0_23 = arith.constant 0 : index
    %18 = vector.load %arg4[%c0_21, %c0_22, %c0_23] : memref<1x16x128xbf16, #tpu.memory_space<vmem>>, vector<1x16x18xbf16>
    %19 = vector.shape_cast %18 : vector<1x16x18xbf16> to vector<16x18xbf16>
    %c48_24 = arith.constant 48 : index
    %c366 = arith.constant 366 : index
    %20 = vector.load %arg9[%c48_24, %c366] : memref<144x384xbf16, #tpu.memory_space<vmem>>, vector<16x18xbf16>
    tpu.vector_store %arg9[%c48_24, %c366], %19 {strides = array<i32>} : memref<144x384xbf16, #tpu.memory_space<vmem>>, vector<16x18xbf16>,
    %c0_25 = arith.constant 0 : index
    %c0_26 = arith.constant 0 : index
    %c19 = arith.constant 19 : index
    %21 = vector.load %arg3[%c0_25, %c0_26, %c19] : memref<1x16x384xbf16, #tpu.memory_space<vmem>>, vector<1x16x365xbf16>
    %22 = vector.shape_cast %21 : vector<1x16x365xbf16> to vector<16x365xbf16>
    %c64 = arith.constant 64 : index
    %c0_27 = arith.constant 0 : index
    %23 = vector.load %arg9[%c64, %c0_27] : memref<144x384xbf16, #tpu.memory_space<vmem>>, vector<16x365xbf16>
    tpu.vector_store %arg9[%c64, %c0_27], %22 {strides = array<i32>} : memref<144x384xbf16, #tpu.memory_space<vmem>>, vector<16x365xbf16>,
    %c0_28 = arith.constant 0 : index
    %c0_29 = arith.constant 0 : index
    %c0_30 = arith.constant 0 : index
    %24 = vector.load %arg4[%c0_28, %c0_29, %c0_30] : memref<1x16x128xbf16, #tpu.memory_space<vmem>>, vector<1x16x19xbf16>
    %25 = vector.shape_cast %24 : vector<1x16x19xbf16> to vector<16x19xbf16>
    %c64_31 = arith.constant 64 : index
    %c365 = arith.constant 365 : index
    %26 = vector.load %arg9[%c64_31, %c365] : memref<144x384xbf16, #tpu.memory_space<vmem>>, vector<16x19xbf16>
    tpu.vector_store %arg9[%c64_31, %c365], %25 {strides = array<i32>} : memref<144x384xbf16, #tpu.memory_space<vmem>>, vector<16x19xbf16>,
    %c0_32 = arith.constant 0 : index
    %c0_33 = arith.constant 0 : index
    %c20 = arith.constant 20 : index
    %27 = vector.load %arg3[%c0_32, %c0_33, %c20] : memref<1x16x384xbf16, #tpu.memory_space<vmem>>, vector<1x16x364xbf16>
    %28 = vector.shape_cast %27 : vector<1x16x364xbf16> to vector<16x364xbf16>
    %c80 = arith.constant 80 : index
    %c0_34 = arith.constant 0 : index
    %29 = vector.load %arg9[%c80, %c0_34] : memref<144x384xbf16, #tpu.memory_space<vmem>>, vector<16x364xbf16>
    tpu.vector_store %arg9[%c80, %c0_34], %28 {strides = array<i32>} : memref<144x384xbf16, #tpu.memory_space<vmem>>, vector<16x364xbf16>,
    %c0_35 = arith.constant 0 : index
    %c0_36 = arith.constant 0 : index
    %c0_37 = arith.constant 0 : index
    %30 = vector.load %arg4[%c0_35, %c0_36, %c0_37] : memref<1x16x128xbf16, #tpu.memory_space<vmem>>, vector<1x16x20xbf16>
    %31 = vector.shape_cast %30 : vector<1x16x20xbf16> to vector<16x20xbf16>
    %c80_38 = arith.constant 80 : index
    %c364 = arith.constant 364 : index
    %32 = vector.load %arg9[%c80_38, %c364] : memref<144x384xbf16, #tpu.memory_space<vmem>>, vector<16x20xbf16>
    tpu.vector_store %arg9[%c80_38, %c364], %31 {strides = array<i32>} : memref<144x384xbf16, #tpu.memory_space<vmem>>, vector<16x20xbf16>,
    %c0_39 = arith.constant 0 : index
    %c0_40 = arith.constant 0 : index
    %c36 = arith.constant 36 : index
    %33 = vector.load %arg3[%c0_39, %c0_40, %c36] : memref<1x16x384xbf16, #tpu.memory_space<vmem>>, vector<1x16x348xbf16>
    %34 = vector.shape_cast %33 : vector<1x16x348xbf16> to vector<16x348xbf16>
    %c96 = arith.constant 96 : index
    %c0_41 = arith.constant 0 : index
    %35 = vector.load %arg9[%c96, %c0_41] : memref<144x384xbf16, #tpu.memory_space<vmem>>, vector<16x348xbf16>
    tpu.vector_store %arg9[%c96, %c0_41], %34 {strides = array<i32>} : memref<144x384xbf16, #tpu.memory_space<vmem>>, vector<16x348xbf16>,
    %c0_42 = arith.constant 0 : index
    %c0_43 = arith.constant 0 : index
    %c0_44 = arith.constant 0 : index
    %36 = vector.load %arg4[%c0_42, %c0_43, %c0_44] : memref<1x16x128xbf16, #tpu.memory_space<vmem>>, vector<1x16x36xbf16>
    %37 = vector.shape_cast %36 : vector<1x16x36xbf16> to vector<16x36xbf16>
    %c96_45 = arith.constant 96 : index
    %c348 = arith.constant 348 : index
    %38 = vector.load %arg9[%c96_45, %c348] : memref<144x384xbf16, #tpu.memory_space<vmem>>, vector<16x36xbf16>
    tpu.vector_store %arg9[%c96_45, %c348], %37 {strides = array<i32>} : memref<144x384xbf16, #tpu.memory_space<vmem>>, vector<16x36xbf16>,
    %c0_46 = arith.constant 0 : index
    %c0_47 = arith.constant 0 : index
    %c37 = arith.constant 37 : index
    %39 = vector.load %arg3[%c0_46, %c0_47, %c37] : memref<1x16x384xbf16, #tpu.memory_space<vmem>>, vector<1x16x347xbf16>
    %40 = vector.shape_cast %39 : vector<1x16x347xbf16> to vector<16x347xbf16>
    %c112 = arith.constant 112 : index
    %c0_48 = arith.constant 0 : index
    %41 = vector.load %arg9[%c112, %c0_48] : memref<144x384xbf16, #tpu.memory_space<vmem>>, vector<16x347xbf16>
    tpu.vector_store %arg9[%c112, %c0_48], %40 {strides = array<i32>} : memref<144x384xbf16, #tpu.memory_space<vmem>>, vector<16x347xbf16>,
    %c0_49 = arith.constant 0 : index
    %c0_50 = arith.constant 0 : index
    %c0_51 = arith.constant 0 : index
    %42 = vector.load %arg4[%c0_49, %c0_50, %c0_51] : memref<1x16x128xbf16, #tpu.memory_space<vmem>>, vector<1x16x37xbf16>
    %43 = vector.shape_cast %42 : vector<1x16x37xbf16> to vector<16x37xbf16>
    %c112_52 = arith.constant 112 : index
    %c347 = arith.constant 347 : index
    %44 = vector.load %arg9[%c112_52, %c347] : memref<144x384xbf16, #tpu.memory_space<vmem>>, vector<16x37xbf16>
    tpu.vector_store %arg9[%c112_52, %c347], %43 {strides = array<i32>} : memref<144x384xbf16, #tpu.memory_space<vmem>>, vector<16x37xbf16>,
    %c0_53 = arith.constant 0 : index
    %c0_54 = arith.constant 0 : index
    %c38 = arith.constant 38 : index
    %45 = vector.load %arg3[%c0_53, %c0_54, %c38] : memref<1x16x384xbf16, #tpu.memory_space<vmem>>, vector<1x16x346xbf16>
    %46 = vector.shape_cast %45 : vector<1x16x346xbf16> to vector<16x346xbf16>
    %c128 = arith.constant 128 : index
    %c0_55 = arith.constant 0 : index
    %47 = vector.load %arg9[%c128, %c0_55] : memref<144x384xbf16, #tpu.memory_space<vmem>>, vector<16x346xbf16>
    tpu.vector_store %arg9[%c128, %c0_55], %46 {strides = array<i32>} : memref<144x384xbf16, #tpu.memory_space<vmem>>, vector<16x346xbf16>,
    %c0_56 = arith.constant 0 : index
    %c0_57 = arith.constant 0 : index
    %c0_58 = arith.constant 0 : index
    %48 = vector.load %arg4[%c0_56, %c0_57, %c0_58] : memref<1x16x128xbf16, #tpu.memory_space<vmem>>, vector<1x16x38xbf16>
    %49 = vector.shape_cast %48 : vector<1x16x38xbf16> to vector<16x38xbf16>
    %c128_59 = arith.constant 128 : index
    %c346 = arith.constant 346 : index
    %50 = vector.load %arg9[%c128_59, %c346] : memref<144x384xbf16, #tpu.memory_space<vmem>>, vector<16x38xbf16>
    tpu.vector_store %arg9[%c128_59, %c346], %49 {strides = array<i32>} : memref<144x384xbf16, #tpu.memory_space<vmem>>, vector<16x38xbf16>,
    %c0_60 = arith.constant 0 : index
    %c0_61 = arith.constant 0 : index
    %51 = vector.load %arg5[%c0_60, %c0_61] : memref<16x144xbf16, #tpu.memory_space<vmem>>, vector<16x144xbf16>
    %c0_62 = arith.constant 0 : index
    %c0_63 = arith.constant 0 : index
    %52 = vector.load %arg9[%c0_62, %c0_63] : memref<144x384xbf16, #tpu.memory_space<vmem>>, vector<144x384xbf16>
    %cst = arith.constant dense<0.000000e+00> : vector<16x384xf32>
    %53 = tpu.matmul %51, %52, %cst {dimension_numbers = #tpu.dot_dimension_numbers<[1], [0], [0], [1], [0, 0, 1, 1], [], []>} : vector<16x144xbf16>, vector<144x384xbf16>, vector<16x384xf32> -> vector<16x384xf32>
    %c0_64 = arith.constant 0 : index
    %c0_65 = arith.constant 0 : index
    %54 = vector.load %arg6[%c0_64, %c0_65] : memref<16x1xf32, #tpu.memory_space<vmem>>, vector<16x1xf32>
    %55 = vector.broadcast %54 : vector<16x1xf32> to vector<16x384xf32>
    %56 = arith.mulf %53, %55 : vector<16x384xf32>
    %c0_66 = arith.constant 0 : index
    %c0_67 = arith.constant 0 : index
    %57 = vector.load %arg7[%c0_66, %c0_67] : memref<16x1xf32, #tpu.memory_space<vmem>>, vector<16x1xf32>
    %58 = vector.broadcast %57 : vector<16x1xf32> to vector<16x384xf32>
    %59 = arith.addf %56, %58 : vector<16x384xf32>
    %60 = arith.negf %59 : vector<16x384xf32>
    %61 = math.exp %60 : vector<16x384xf32>
    %cst_68 = arith.constant 1.000000e+00 : f32
    %62 = vector.broadcast %cst_68 : f32 to vector<16x384xf32>
    %63 = arith.addf %62, %61 : vector<16x384xf32>
    %64 = arith.divf %62, %63 : vector<16x384xf32>
    %65 = arith.mulf %59, %64 : vector<16x384xf32>
    %66 = arith.truncf %65 : vector<16x384xf32> to vector<16x384xbf16>
    %c0_69 = arith.constant 0 : index
    %c0_70 = arith.constant 0 : index
    %c0_71 = arith.constant 0 : index
    %67 = vector.load %arg8[%c0_69, %c0_70, %c0_71] : memref<1x16x384xbf16, #tpu.memory_space<vmem>>, vector<1x16x384xbf16>
    %68 = vector.shape_cast %67 : vector<1x16x384xbf16> to vector<16x384xbf16>
    %69 = vector.shape_cast %66 : vector<16x384xbf16> to vector<1x16x384xbf16>
    tpu.vector_store %arg8[%c0_69, %c0_70, %c0_71], %69 {strides = array<i32>} : memref<1x16x384xbf16, #tpu.memory_space<vmem>>, vector<1x16x384xbf16>,
    return
  }
  func.func @transform_0(%arg0: i32, %arg1: i32, %arg2: i32) -> (i32, i32, i32) {
    %c0_i32 = arith.constant 0 : i32
    %c0_i32_0 = arith.constant 0 : i32
    return %arg0, %c0_i32, %arg2 : i32, i32, i32
  }
  func.func @transform_1(%arg0: i32, %arg1: i32, %arg2: i32) -> (i32, i32, i32) {
    %c1_i32 = arith.constant 1 : i32
    %0 = arith.addi %arg2, %c1_i32 : i32
    %c3_i32 = arith.constant 3 : i32
    %1 = arith.muli %0, %c3_i32 : i32
    %c0_i32 = arith.constant 0 : i32
    %c0_i32_0 = arith.constant 0 : i32
    return %arg0, %c0_i32, %1 : i32, i32, i32
  }
  func.func @transform_2(%arg0: i32, %arg1: i32, %arg2: i32) -> (i32, i32) {
    %c0_i32 = arith.constant 0 : i32
    %c0_i32_0 = arith.constant 0 : i32
    return %arg1, %c0_i32 : i32, i32
  }
  func.func @transform_3(%arg0: i32, %arg1: i32, %arg2: i32) -> (i32, i32) {
    %c0_i32 = arith.constant 0 : i32
    %c0_i32_0 = arith.constant 0 : i32
    return %arg1, %c0_i32 : i32, i32
  }
  func.func @transform_4(%arg0: i32, %arg1: i32, %arg2: i32) -> (i32, i32) {
    %c0_i32 = arith.constant 0 : i32
    %c0_i32_0 = arith.constant 0 : i32
    return %arg1, %c0_i32 : i32, i32
  }
  func.func @transform_5(%arg0: i32, %arg1: i32, %arg2: i32) -> (i32, i32, i32) {
    %c0_i32 = arith.constant 0 : i32
    return %arg0, %arg1, %arg2 : i32, i32, i32
  }
}

</mosaic_0001>

<bundles_post_ra>
// kernel: tpu_custom_call.1
= control target key start
LH: loop header
LB: loop body
LE: loop exit
PB: predicated region body
PF: predicated region fallthrough
CT: control target
= control target key end

     0   :  { %s2323_s0 = inlined_call_operand.hbm [shape: bf16[2,16,522], index: 0, kind: input, shape index: {}]   ;;  %s2324_s1 = inlined_call_operand.hbm [shape: bf16[2,16,522], index: 1, kind: input, shape index: {}]   ;;  %s2325_s2 = inlined_call_operand.vmem [shape: bf16[16,144], index: 2, kind: input, shape index: {}]   ;;  %s2326_s3 = inlined_call_operand.vmem [shape: f32[16,1], index: 3, kind: input, shape index: {}]   ;;  %s2327_s4 = inlined_call_operand.vmem [shape: f32[16,1], index: 4, kind: input, shape index: {}]   ;;  %s2328_s5 = inlined_call_operand.hbm [shape: bf16[2,16,384], index: 5, kind: output, shape index: {}]  }
   0x1   :  { %2333 = sst [smem:[#allocation17_spill]] %s2323_s0 }
   0x2   :  { %10 = vsyncpa [#allocation4], 0 }
   0x3   :  { %12 = vsyncpa [#allocation4 + $0x1], 0 }
   0x4   :  { %13 = vsyncpa [#allocation7], 0 }
   0x5   :  { %15 = vsyncpa [#allocation7 + $0x1], 0 }
   0x6   :  { %16 = vsyncpa [#allocation5], 0 }
   0x7   :  { %18 = vsyncpa [#allocation5 + $0x1], 0  ;;  %s1900_s18 = smov 0   ;;  %s1902_s19 = smov 0  }
   0x8   :  { %s1904_s20 = smov 0   ;;  %s1906_s21 = smov 0  }
   0x9   :  { %s1908_s22 = smov 0   ;;  %s1910_s23 = smov 0  }
   0xa LB: > { %2334 = sst [smem:[#allocation12_spill]] %s1840_s20  ;;  %s1423_s24 = sadd.s32 4294967295, %s1852_s23   ;;  %s1852_s23 = sphi %s1910_s23, %s24_s23   ;;  %s1848_s22 = sphi %s1908_s22, %s2351_s22   ;;  %s1844_s21 = sphi %s1906_s21, %s2350_s21   ;;  %s1840_s20 = sphi %s1904_s20, %s2349_s20   ;;  %s1836_s19 = sphi %s1902_s19, %s2353_s19   ;;  %s1832_s18 = sphi %s1900_s18, %s2352_s18  }
   0xb   : > { %2335 = sst [smem:[#allocation13_spill]] %s1848_s22  ;;  %s1424_s25 = sadd.s32 4294967294, %s1852_s23  }
   0xc   : > { %s43_s26 = sadd.s32 1, %s1848_s22  ;;  %s52_s27 = sadd.s32 1, %s1840_s20 }
   0xd   : > { %p45_p0 = scmp.ge.s32.totalorder %s43_s26, 2  ;;  %p59_p1 = scmp.ne.s32.totalorder %s1840_s20, %s1836_s19 }
   0xe   : > { %p60_p2 = scmp.eq.s32.totalorder %s1852_s23, 0  ;;  %p65_p3 = scmp.ne.s32.totalorder %s1836_s19, %s1832_s18 }
   0xf   : > { %s2355_s26 = smov (%p45_p0, %s43_s26), 0  ;;  %p66_p5 = scmp.eq.s32.totalorder %s1423_s24, 0 }
  0x10   : > { %2336 = sst [smem:[#allocation14_spill]] %s2355_s26  ;;  %p1941_p4 = por %p60_p2, %p59_p1 }
  0x11   : > { %s47_s29 = ssub.s32 %s1848_s22, %s2355_s26  ;;  %p203_p6 = scmp.eq.s32.totalorder %s1423_s24, 1 }
  0x12   : > { %p50_p7 = scmp.eq.s32.totalorder %s47_s29, 0  ;;  %p1947_p8 = por %p66_p5, %p65_p3 }
  0x13   : > { %p1951_p9 = por %p203_p6, %p59_p1  ;;  %p209_p10 = scmp.eq.s32.totalorder %s1424_s25, 1 }
  0x14   : > { %s1956_s7 = scalar_select %p50_p7, %s1840_s20, %s52_s27  }
  0x15   : > { %p1958_p11 = por %p209_p10, %p65_p3  ;;  %p1429_p12 = scmp.ge.s32.totalorder %s1852_s23, 2 }
  0x16   : > { %2340 = sst [smem:[#allocation15_spill]] %s1956_s7  ;;  %p1613_p13 = scmp.lt.s32.totalorder %s1852_s23, 2 }
  0x17   : > { %s2341_s8 = scalar_select %p1958_p11, 1, 0 }
  0x18   : > { %s1965_s9 = sand.u32 1, %s1840_s20   ;;  %s1593_s11 = smul.u32 40, %s1848_s22 }
  0x19   : > { %2342 = sst [smem:[#allocation16_spill]] %s2341_s8  ;;  %s1592_s10 = smul.u32 24, %s1965_s9 }
  0x1a   : > { %p1971_p0 = pnand %p1613_p13, %p1941_p4  ;;  %s2344_s0 = sld [smem:[#allocation17_spill]] }
  0x1b   : > { %s261_s16 = scalar_lea.vmem [#allocation3], %s1592_s10  ;;  %s258_s25 = scalar_lea.sflag [#allocation4], %s1965_s9 }
  0x1c   : > { %s279_s17 = sshll.u32 %s261_s16, 4  ;;  %s1854_s27 = smov 320   ;;  %s280_s17 = int_to_ptr.vmem [resolvable:$true] %s279_s17 }
  0x1d   : > { %s1855_s29 = smov 192   ;;  %s1856_s26 = smov 12  }
  0x1e   : > { %p1433_p1 = scmp.ge.s32.totalorder %s1852_s23, 1  ;;  %p312_p2 = scmp.lt.s32.totalorder %s1852_s23, 3 }
  0x1f   : > { %s1431_s28 = sshll.u32 %s1965_s9, 3  ;;  %s1310_s10 = scalar_lea.hbm %s2324_s1, %s1593_s11 }
  0x20   : > { %s274_s15 = scalar_lea.hbm %s2344_s0, %s1593_s11  ;;  %p313_p3 = pnand %p1433_p1, %p312_p2 }
  0x21   : > { %s277_s24 = sshll.u32 %s274_s15, 4  ;;  %s293_s16 = scalar_lea.vmem [#allocation6], %s1431_s28  ;;  %s278_s24 = int_to_ptr.hbm [resolvable:$true] %s277_s24 }
  0x22   : > { %1605 = dma.hbm_to_vmem [thread:$0]  (!%p1971_p0), %s278_s24, 384, %s280_s17, %s258_s25, %s1854_s27, %s1855_s29, %s1856_s26  }
  0x23   : > { %s304_s15 = sshll.u32 %s293_s16, 4  ;;  %s1311_s0 = scalar_lea.hbm %s1310_s10, 12  ;;  %s305_s15 = int_to_ptr.vmem [resolvable:$true] %s304_s15 }
  0x24   : > { %s302_s22 = sshll.u32 %s1311_s0, 4  ;;  %s290_s7 = scalar_lea.sflag [#allocation7], %s1965_s9  ;;  %s303_s22 = int_to_ptr.hbm [resolvable:$true] %s302_s22 }
  0x25   : > { %s1857_s20 = smov 64   ;;  %s1858_s8 = smov 4  }
  0x26   : > { %1608 = dma.hbm_to_vmem [thread:$0]  (!%p1971_p0), %s303_s22, 128, %s305_s15, %s290_s7, %s1854_s27, %s1857_s20, %s1858_s8  }
  0x27   : > { %316 = sbr.rel (%p313_p3) target bundleno = 481 (0x1e1), region = 40  ;;  %s1991_s26 = sand.u32 (!%p313_p3), 1, %s1836_s19  }
  0x28   : > { %s1594_s11 = smul.u32 (!%p313_p3), 24, %s1991_s26  ;;  %s319_s17 = scalar_lea.sflag (!%p313_p3), [#allocation4], %s1991_s26 }
  0x2a   : > { %s1997_s24 = scalar_lea.vmem (!%p313_p3), [#allocation3], %s1594_s11 }
  0x2c   : > { %1819 = dma.done.wait (%p1947_p8), %s319_s17, 384  }
  0x2d   : > { %1821 = vsyncadd (%p1947_p8), %s319_s17, 4294966912  ;;  %s1434_s0 = sshll.u32 %s1991_s26, 3  ;;  %s329_s20 = scalar_lea.sflag [#allocation7], %s1991_s26 }
  0x2e   : > { %s2005_s22 = scalar_lea.vmem [#allocation6], %s1434_s0 }
  0x2f   : > { %1823 = dma.done.wait (%p1947_p8), %s329_s20, 128  }
  0x30   : > { %1825 = vsyncadd (%p1947_p8), %s329_s20, 4294967168  ;;  %v2012_v0 = vld [vmem:[%s1997_s24 + $0xc] sm:$0xff]  ;;  %v2015_v1 = vld [vmem:[%s1997_s24] sm:$0xff]  ;;  %s1859_s7 = smov 91   ;;  %s1860_s30 = smov 92   ;;  %vm684_vm0 = vcmask 748544  }
  0x31   : > { %713 = vrot.lane.b32.xlu1 %v2012_v0, %s1859_s7  ;;  %709 = vrot.lane.b32.xlu0 %v2015_v1, %s1859_s7  ;;  %414 = vst [vmem:[#allocation2] sm:$0xff] %v2015_v1  ;;  %v704_v2 = vld [vmem:[%s1997_s24 + $0x14] sm:$0xf]  ;;  %v702_v3 = vld [vmem:[%s1997_s24 + $0x8] sm:$0xf]  ;;  %s1861_s8 = smov 108  }
  0x32   : > { %662 = vrot.lane.b32.xlu2 %v2015_v1, %s1860_s30  ;;  %416 = vst [vmem:[#allocation2 + $0xc] sm:$0xff] %v2012_v0  ;;  %v655_v4 = vld [vmem:[%s1997_s24 + $0x8] sm:$0xf]  ;;  %v657_v5 = vld [vmem:[%s1997_s24 + $0x14] sm:$0xf]  ;;  %s1862_s9 = smov 109  }
  0x33   : > { %v608_v6 = vld [vmem:[%s1997_s24 + $0x8] sm:$0xf]  ;;  %v610_v7 = vld [vmem:[%s1997_s24 + $0x14] sm:$0xf]  ;;  %v735_v9 = vld [vmem:[%s2005_s22] sm:$0xf] }
  0x34   : > { %v736_v8 = vld [vmem:[%s2005_s22 + $0x4] sm:$0xf]  ;;  %v561_v10 = vld [vmem:[%s1997_s24 + $0x8] sm:$0xf]  ;;  %s1863_s12 = smov 90   ;;  %s1864_s25 = smov 110  }
  0x35   : > { %v563_v11 = vld [vmem:[%s1997_s24 + $0x14] sm:$0xf]  ;;  %v749_v12 = vld [vmem:[%s1997_s24 + $0x8] sm:$0xf]  ;;  %v688_v13 = vld [vmem:[%s2005_s22] sm:$0xf] }
  0x36   : > { %v751_v14 = vld [vmem:[%s1997_s24 + $0x14] sm:$0xf]  ;;  %v514_v16 = vld [vmem:[%s1997_s24 + $0x8] sm:$0xf]  ;;  %v641_v17 = vld [vmem:[%s2005_s22] sm:$0xf] }
  0x37   : > { %v689_v15 = vld [vmem:[%s2005_s22 + $0x4] sm:$0xf]  ;;  %v467_v20 = vld [vmem:[%s1997_s24 + $0x8] sm:$0xf]  ;;  %s1865_s27 = smov 126   ;;  %s1866_s29 = smov 127  }
  0x38   : > { %v516_v18 = vld [vmem:[%s1997_s24 + $0x14] sm:$0xf]  ;;  %v594_v21 = vld [vmem:[%s2005_s22] sm:$0xf]  ;;  %v419_v25 = vld [vmem:[%s1997_s24 + $0x8] sm:$0xf] }
  0x39   : > { %715 = vrot.lane.b32.xlu1 %v704_v2, %s1859_s7  ;;  %711 = vrot.lane.b32.xlu0 %v702_v3, %s1859_s7  ;;  %v642_v19 = vld [vmem:[%s2005_s22 + $0x4] sm:$0xf]  ;;  %vm438_vm1 = vcmask 1043456   ;;  %vm675_vm2 = vcmask 752640   ;;  %v547_v29 = vld [vmem:[%s2005_s22] sm:$0xf] }
  0x3a   : > { %664 = vrot.lane.b32.xlu2 %v655_v4, %s1860_s30  ;;  %v469_v22 = vld [vmem:[%s1997_s24 + $0x14] sm:$0xf]  ;;  %v500_v36 = vld [vmem:[%s2005_s22] sm:$0xf]  ;;  %vm637_vm3 = vcmask 879616   ;;  %vm731_vm4 = vcmask 740352  }
  0x3b   : > { %v595_v23 = vld [vmem:[%s2005_s22 + $0x4] sm:$0xf]  ;;  %v782_v37 = vld [vmem:[%s2005_s22] sm:$0xf]  ;;  %vm722_vm5 = vcmask 744448   ;;  %vm590_vm6 = vcmask 887808  }
  0x3c   : > { %v421_v30 = vld [vmem:[%s1997_s24 + $0x14] sm:$0xf]  ;;  %v453_v42 = vld [vmem:[%s2005_s22] sm:$0xf]  ;;  %vm628_vm7 = vcmask 883712   ;;  %vm745_vm8 = vcmask 1044184  }
  0x3d   : > { %v548_v32 = vld [vmem:[%s2005_s22 + $0x4] sm:$0xf]  ;;  %vm698_vm9 = vcmask 1044192   ;;  %vm581_vm10 = vcmask 891904   ;;  %vm778_vm11 = vcmask 732160   ;;  %vm651_vm12 = vcmask 1044320  }
  0x3e   : > { %v501_v35 = vld [vmem:[%s2005_s22 + $0x4] sm:$0xf]  ;;  %vm769_vm13 = vcmask 736256   ;;  %vm543_vm14 = vcmask 896000   ;;  %vm604_vm15 = vcmask 1044328   ;;  %s1239_s14 = scalar_lea.sflag [#allocation5], %s1991_s26 }
  0x3f   : > { %v783_v41 = vld [vmem:[%s2005_s22 + $0x4] sm:$0xf] }
  0x40   : > { %v454_v43 = vld [vmem:[%s2005_s22 + $0x4] sm:$0xf] }
  0x41   : > { %668 = vrot.lane.b32.xlu1 %v657_v5, %s1860_s30  ;;  %666 = vrot.lane.b32.xlu0 %v2012_v0, %s1860_s30 }
  0x42   : > { %615 = vrot.lane.b32.xlu2 %v2015_v1, %s1861_s8 }
  0x49   : > { %619 = vrot.lane.b32.xlu1 %v2012_v0, %s1861_s8  ;;  %617 = vrot.lane.b32.xlu0 %v608_v6, %s1861_s8 }
  0x4a   : > { %621 = vrot.lane.b32.xlu2 %v610_v7, %s1861_s8 }
  0x51   : > { %741 = vrot.lane.b32.xlu1 %v736_v8, %s1859_s7  ;;  %739 = vrot.lane.b32.xlu0 %v735_v9, %s1859_s7 }
  0x52   : > { %568 = vrot.lane.b32.xlu2 %v2015_v1, %s1862_s9 }
  0x59   : > { %572 = vrot.lane.b32.xlu1 %v2012_v0, %s1862_s9  ;;  %570 = vrot.lane.b32.xlu0 %v561_v10, %s1862_s9 }
  0x5a   : > { %574 = vrot.lane.b32.xlu2 %v563_v11, %s1862_s9 }
  0x61   : > { %758 = vrot.lane.b32.xlu1 %v749_v12, %s1863_s12  ;;  %756 = vrot.lane.b32.xlu0 %v2015_v1, %s1863_s12 }
  0x62   : > { %760 = vrot.lane.b32.xlu2 %v2012_v0, %s1863_s12 }
  0x69   : > { %692 = vrot.lane.b32.xlu1 %v688_v13, %s1860_s30  ;;  %762 = vrot.lane.b32.xlu0 %v751_v14, %s1863_s12 }
  0x6a   : > { %694 = vrot.lane.b32.xlu2 %v689_v15, %s1860_s30 }
  0x71   : > { %523 = vrot.lane.b32.xlu1 %v514_v16, %s1864_s25  ;;  %521 = vrot.lane.b32.xlu0 %v2015_v1, %s1864_s25 }
  0x72   : > { %525 = vrot.lane.b32.xlu2 %v2012_v0, %s1864_s25 }
  0x79   : > { %645 = vrot.lane.b32.xlu1 %v641_v17, %s1861_s8  ;;  %527 = vrot.lane.b32.xlu0 %v516_v18, %s1864_s25 }
  0x7a   : > { %647 = vrot.lane.b32.xlu2 %v642_v19, %s1861_s8 }
  0x81   : > { %476 = vrot.lane.b32.xlu1 %v467_v20, %s1865_s27  ;;  %474 = vrot.lane.b32.xlu0 %v2015_v1, %s1865_s27 }
  0x82   : > { %478 = vrot.lane.b32.xlu2 %v2012_v0, %s1865_s27 }
  0x89   : > { %598 = vrot.lane.b32.xlu1 %v594_v21, %s1862_s9  ;;  %480 = vrot.lane.b32.xlu0 %v469_v22, %s1865_s27 }
  0x8a   : > { %600 = vrot.lane.b32.xlu2 %v595_v23, %s1862_s9 }
  0x8c   : > { %v663_v24 = vpop.permute.xlu2 %662 }
  0x8d   : > { %v670_v26 = vrot.slane %v663_v24, 4 }
  0x91   : > { %428 = vrot.lane.b32.xlu1 %v419_v25, %s1866_s29  ;;  %426 = vrot.lane.b32.xlu0 %v2015_v1, %s1866_s29 }
  0x92   : > { %430 = vrot.lane.b32.xlu2 %v2012_v0, %s1866_s29 }
  0x94   : > { %v665_v27 = vpop.permute.xlu2 %664 }
  0x95   : > { %v671_v28 = vrot.slane %v665_v27, 4  ;;  %685 = vst.msk [vmem:[#allocation2 + $0x98] sm:$0xf] %vm684_vm0, %v665_v27 }
  0x97   : > { %v674_v31 = vsel %vm438_vm1, %v670_v26, %v671_v28 }
  0x98   : > { %v676_v33 = vsel %vm675_vm2, %v663_v24, %v674_v31 }
  0x99   : > { %551 = vrot.lane.b32.xlu1 %v547_v29, %s1864_s25  ;;  %432 = vrot.lane.b32.xlu0 %v421_v30, %s1866_s29  ;;  %683 = vst [vmem:[#allocation2 + $0x90] sm:$0xff] %v676_v33 }
  0x9a   : > { %553 = vrot.lane.b32.xlu2 %v548_v32, %s1864_s25  ;;  %s2270_s25 = scalar_lea.vmem [#allocation8], %s1594_s11  ;;  %s1595_s11 = smul.u32 24, %s1844_s21 }
  0x9b   : > { %s1256_s21 = sshll.u32 %s2270_s25, 4  ;;  %s1257_s21 = int_to_ptr.vmem [resolvable:$true] %s1256_s21 }
  0x9c   : > { %v2100_v34 = vpop.permute.xlu2 %615  ;;  %s1255_s28 = scalar_lea.hbm %s2328_s5, %s1595_s11 }
  0x9d   : > { %v623_v7 = vrot.slane %v2100_v34, 4  ;;  %s1258_s13 = sshll.u32 %s1255_s28, 4  ;;  %s1259_s13 = int_to_ptr.hbm [resolvable:$true] %s1258_s13 }
  0x9e   : > { %s1780_s10 = sshra.s32 %s1259_s13, 4  ;;  %s1781_s10 = int_to_ptr.hbm [resolvable:$true] %s1780_s10 }
  0x9f   : > { %s1782_s16 = scalar_lea.hbm %s1781_s10, 24  ;;  %p1787_p7 = scmp.lt.s32.totalorder %s1781_s10, %s2328_s5 }
  0xa0   : > { %v1517_v13 = vld [vmem:[#allocation2 + $0x90] sm:$0xf]  ;;  %v1583_v17 = vld [vmem:[#allocation2 + $0x94] sm:$0xf]  ;;  %p1783_p4 = scmp.ne.s32.totalorder %s1781_s10, %s1782_s16 }
  0xa1   : > { %506 = vrot.lane.b32.xlu1 %v501_v35, %s1865_s27  ;;  %504 = vrot.lane.b32.xlu0 %v500_v36, %s1865_s27 }
  0xa2   : > { %786 = vrot.lane.b32.xlu2 %v782_v37, %s1863_s12  ;;  %p1784_p5 = pnand %p1783_p4, %p1951_p9 }
  0xa3   : > { %v714_v38 = vpop.permute.xlu1 %713  ;;  %v710_v39 = vpop.permute.xlu0 %709 }
  0xa4   : > { %v622_v40 = vpop.permute.xlu2 %621  ;;  %v719_v46 = vrot.slane %v714_v38, 4  ;;  %v717_v47 = vrot.slane %v710_v39, 4  ;;  %p1785_p6 = pneg %p1784_p5 }
  0xa5   : > { %640 = vst.msk [vmem:[#allocation2 + $0x8c] sm:$0xf] %vm637_vm3, %v622_v40  ;;  %v626_v4 = vrot.slane %v622_v40, 4 }
  0xa9   : > { %788 = vrot.lane.b32.xlu0 %v783_v41, %s1863_s12  ;;  %457 = vrot.lane.b32.xlu1 %v453_v42, %s1866_s29 }
  0xaa   : > { %459 = vrot.lane.b32.xlu2 %v454_v43, %s1866_s29 }
  0xab   : > { %v716_v44 = vpop.permute.xlu1 %715  ;;  %v712_v45 = vpop.permute.xlu0 %711 }
  0xac   : > { %v720_v48 = vrot.slane %v716_v44, 4  ;;  %734 = vst.msk [vmem:[#allocation2 + $0xbc] sm:$0xf] %vm731_vm4, %v716_v44  ;;  %v718_v49 = vrot.slane %v712_v45, 4  ;;  %v2115_v50 = vpop.permute.xlu2 %568 }
  0xad   : > { %732 = vst.msk [vmem:[#allocation2 + $0xb0] sm:$0xf] %vm731_vm4, %v712_v45  ;;  %v576_v33 = vrot.slane %v2115_v50, 4  ;;  %vm557_vm4 = vcmask 1044336  }
  0xae   : > { %v724_v51 = vsel %vm438_vm1, %v719_v46, %v720_v48  ;;  %v721_v52 = vsel %vm438_vm1, %v717_v47, %v718_v49 }
  0xaf   : > { %v725_v53 = vsel %vm722_vm5, %v714_v38, %v724_v51  ;;  %v723_v54 = vsel %vm722_vm5, %v710_v39, %v721_v52  ;;  %vm487_vm5 = vcmask 1031168  }
  0xb0   : > { %733 = vst [vmem:[#allocation2 + $0xb4] sm:$0xff] %v725_v53 }
  0xb1   : > { %730 = vst [vmem:[#allocation2 + $0xa8] sm:$0xff] %v723_v54 }
  0xb3   : > { %v669_v55 = vpop.permute.xlu1 %668  ;;  %v667_v56 = vpop.permute.xlu0 %666 }
  0xb4   : > { %v673_v57 = vrot.slane %v669_v55, 4  ;;  %687 = vst.msk [vmem:[#allocation2 + $0xa4] sm:$0xf] %vm684_vm0, %v669_v55  ;;  %v672_v58 = vrot.slane %v667_v56, 4  ;;  %v2120_v59 = vpop.permute.xlu2 %574  ;;  %vm534_vm0 = vcmask 900096  }
  0xb5   : > { %593 = vst.msk [vmem:[#allocation2 + $0x74] sm:$0xf] %vm590_vm6, %v2120_v59  ;;  %v579_v30 = vrot.slane %v2120_v59, 4 }
  0xb6   : > { %v677_v60 = vsel %vm438_vm1, %v672_v58, %v673_v57 }
  0xb7   : > { %v678_v61 = vsel %vm675_vm2, %v667_v56, %v677_v60  ;;  %v1587_v62 = vld [vmem:[#allocation2 + $0xb0] sm:$0xf0]  ;;  %v1531_v63 = vld [vmem:[#allocation2 + $0xb4] sm:$0xf0]  ;;  %vm496_vm2 = vcmask 1027072  }
  0xb8   : > { %686 = vst [vmem:[#allocation2 + $0x9c] sm:$0xff] %v678_v61  ;;  %v1529_v0 = vld [vmem:[#allocation2 + $0xa8] sm:$0xf]  ;;  %v1586_v1 = vld [vmem:[#allocation2 + $0xac] sm:$0xf] }
  0xb9   : > { %v1530_v2 = vor.u32 %v1587_v62, %v1529_v0  ;;  %v1534_v3 = vor.u32 %v1586_v1, %v1531_v63 }
  0xbb   : > { %990 = vmatpush.bf16.msra.mxu0 %v1530_v2  ;;  %1018 = vmatpush.bf16.msra.mxu2 %v1534_v3  ;;  %v620_v5 = vpop.permute.xlu1 %619  ;;  %v618_v6 = vpop.permute.xlu0 %617 }
  0xbc   : > { %v625_v8 = vrot.slane %v620_v5, 4  ;;  %v624_v9 = vrot.slane %v618_v6, 4  ;;  %638 = vst.msk [vmem:[#allocation2 + $0x80] sm:$0xf] %vm637_vm3, %v618_v6  ;;  %v2128_v10 = vpop.permute.xlu2 %760  ;;  %vm986_vm3 = vcmask 130048  }
  0xbd   : > { %v766_v56 = vrot.slane %v2128_v10, 4 }
  0xbe   : > { %v627_v11 = vsel %vm438_vm1, %v623_v7, %v624_v9  ;;  %v630_v12 = vsel %vm438_vm1, %v625_v8, %v626_v4 }
  0xbf   : > { %v629_v14 = vsel %vm628_vm7, %v2100_v34, %v627_v11  ;;  %v631_v15 = vsel %vm628_vm7, %v620_v5, %v630_v12  ;;  %v1584_v16 = vld [vmem:[#allocation2 + $0x98] sm:$0xf0]  ;;  %v1519_v18 = vld [vmem:[#allocation2 + $0x9c] sm:$0xf0]  ;;  %vm449_vm7 = vcmask 1035264  }
  0xc0   : > { %636 = vst [vmem:[#allocation2 + $0x78] sm:$0xff] %v629_v14  ;;  %v1518_v19 = vor.u32 %v1584_v16, %v1517_v13  ;;  %v1522_v20 = vor.u32 %v1583_v17, %v1519_v18 }
  0xc1   : > { %639 = vst [vmem:[#allocation2 + $0x84] sm:$0xff] %v631_v15 }
  0xc2   : > { %991 = vmatpush.bf16.msra.mxu0 %v1518_v19  ;;  %1019 = vmatpush.bf16.msra.mxu2 %v1522_v20 }
  0xc3   : > { %v742_v21 = vpop.permute.xlu1 %741  ;;  %v740_v22 = vpop.permute.xlu0 %739 }
  0xc4   : > { %747 = vst.msk [vmem:[#allocation2 + $0xbc] sm:$0xf] %vm745_vm8, %v742_v21  ;;  %v695_v23 = vpop.permute.xlu2 %694 }
  0xc5   : > { %746 = vst.msk [vmem:[#allocation2 + $0xb0] sm:$0xf] %vm745_vm8, %v740_v22  ;;  %vm440_vm8 = vcmask 1039360  }
  0xc6   : > { %700 = vst.msk [vmem:[#allocation2 + $0xa4] sm:$0xf] %vm698_vm9, %v695_v23  ;;  %v1563_v23 = vld [vmem:[%s2325_s2 + $0x4] sm:$0xf] }
  0xc7   : > { %v1505_v24 = vld [vmem:[#allocation2 + $0x78] sm:$0xf]  ;;  %v1580_v25 = vld [vmem:[#allocation2 + $0x7c] sm:$0xf] }
  0xc8   : > { %v1581_v26 = vld [vmem:[#allocation2 + $0x80] sm:$0xf0]  ;;  %v1507_v27 = vld [vmem:[#allocation2 + $0x84] sm:$0xf0] }
  0xc9   : > { %v1506_v28 = vor.u32 %v1581_v26, %v1505_v24  ;;  %v1510_v29 = vor.u32 %v1580_v25, %v1507_v27  ;;  %v1439_v24 = vld [vmem:[%s2325_s2 + $0x8] sm:$0xf0] }
  0xca   : > { %v2172_v26 = vor.u32 %v1563_v23, %v1439_v24  ;;  %v1447_v23 = vld [vmem:[#allocation2 + $0xc] sm:$0xf0] }
  0xcb   : > { %992 = vmatpush.bf16.msra.mxu0 %v1506_v28  ;;  %1020 = vmatpush.bf16.msra.mxu2 %v1510_v29  ;;  %v573_v31 = vpop.permute.xlu1 %572  ;;  %v571_v32 = vpop.permute.xlu0 %570  ;;  %v1588_v5 = vld [vmem:[#allocation2 + $0xb8] sm:$0xf0] }
  0xcc   : > { %v578_v34 = vrot.slane %v573_v31, 4  ;;  %v577_v35 = vrot.slane %v571_v32, 4  ;;  %591 = vst.msk [vmem:[#allocation2 + $0x68] sm:$0xf] %vm590_vm6, %v571_v32  ;;  %v2137_v36 = vpop.permute.xlu2 %525  ;;  %v1537_v4 = vld [vmem:[#allocation2 + $0xb0] sm:$0xf] }
  0xcd   : > { %v1538_v12 = vor.u32 %v1588_v5, %v1537_v4  ;;  %v1585_v14 = vld [vmem:[#allocation2 + $0xa0] sm:$0xf0]  ;;  %v531_v17 = vrot.slane %v2137_v36, 4  ;;  %vm792_vm6 = vcmask 1044176  }
  0xce   : > { %v580_v37 = vsel %vm438_vm1, %v576_v33, %v577_v35  ;;  %v583_v38 = vsel %vm438_vm1, %v578_v34, %v579_v30  ;;  %v1074_v5 = vld [vmem:[%s2326_s3] sm:$0xff] }
  0xcf   : > { %v582_v39 = vsel %vm581_vm10, %v2115_v50, %v580_v37  ;;  %v584_v40 = vsel %vm581_vm10, %v573_v31, %v583_v38  ;;  %vm510_vm10 = vcmask 1044464  }
  0xd0   : > { %589 = vst [vmem:[#allocation2 + $0x60] sm:$0xff] %v582_v39 }
  0xd1   : > { %592 = vst [vmem:[#allocation2 + $0x6c] sm:$0xff] %v584_v40 }
  0xd3   : > { %v759_v41 = vpop.permute.xlu1 %758  ;;  %v757_v42 = vpop.permute.xlu0 %756 }
  0xd4   : > { %v765_v43 = vrot.slane %v759_v41, 4  ;;  %779 = vst.msk [vmem:[#allocation2 + $0xc8] sm:$0xf] %vm778_vm11, %v759_v41  ;;  %v764_v44 = vrot.slane %v757_v42, 4  ;;  %v648_v45 = vpop.permute.xlu2 %647 }
  0xd5   : > { %653 = vst.msk [vmem:[#allocation2 + $0x8c] sm:$0xf] %vm651_vm12, %v648_v45 }
  0xd6   : > { %v768_v46 = vsel %vm438_vm1, %v764_v44, %v765_v43 }
  0xd7   : > { %v770_v47 = vsel %vm769_vm13, %v757_v42, %v768_v46  ;;  %v1493_v48 = vld [vmem:[#allocation2 + $0x60] sm:$0xf]  ;;  %v1577_v49 = vld [vmem:[#allocation2 + $0x64] sm:$0xf] }
  0xd8   : > { %777 = vst [vmem:[#allocation2 + $0xc0] sm:$0xff] %v770_v47  ;;  %v1578_v50 = vld [vmem:[#allocation2 + $0x68] sm:$0xf0]  ;;  %v1495_v51 = vld [vmem:[#allocation2 + $0x6c] sm:$0xf0] }
  0xd9   : > { %v1494_v52 = vor.u32 %v1578_v50, %v1493_v48  ;;  %v1498_v53 = vor.u32 %v1577_v49, %v1495_v51  ;;  %v411_v49 = vld [vmem:[%s1997_s24 + $0x8] sm:$0xf]  ;;  %v413_v51 = vld [vmem:[%s1997_s24 + $0x14] sm:$0xf]  ;;  %s1786_s24 = scalar_lea.hbm %s2328_s5, 48 }
  0xda   : > { %415 = vst [vmem:[#allocation2 + $0x8] sm:$0xf] %v411_v49  ;;  %p1788_p8 = scmp.lt.s32.totalorder %s1786_s24, %s1782_s16 }
  0xdb   : > { %993 = vmatpush.bf16.msra.mxu0 %v1494_v52  ;;  %1021 = vmatpush.bf16.msra.mxu2 %v1498_v53  ;;  %v693_v54 = vpop.permute.xlu1 %692  ;;  %v763_v55 = vpop.permute.xlu0 %762  ;;  %417 = vst [vmem:[#allocation2 + $0x14] sm:$0xf] %v413_v51 }
  0xdc   : > { %699 = vst.msk [vmem:[#allocation2 + $0x98] sm:$0xf] %vm698_vm9, %v693_v54  ;;  %v767_v57 = vrot.slane %v763_v55, 4  ;;  %v2148_v58 = vpop.permute.xlu2 %478  ;;  %v1582_v25 = vld [vmem:[#allocation2 + $0x88] sm:$0xf0]  ;;  %vm463_vm9 = vcmask 1044472   ;;  %p1789_p10 = por %p1788_p8, %p1787_p7 }
  0xdd   : > { %781 = vst.msk [vmem:[#allocation2 + $0xd4] sm:$0xf] %vm778_vm11, %v763_v55  ;;  %v484_v44 = vrot.slane %v2148_v58, 4 }
  0xde   : > { %v771_v59 = vsel %vm438_vm1, %v766_v56, %v767_v57  ;;  %p1790_p13 = pnand %p1789_p10, %p1785_p6 }
  0xdf   : > { %v772_v60 = vsel %vm769_vm13, %v2128_v10, %v771_v59  ;;  %v1541_v3 = vld [vmem:[#allocation2 + $0xc0] sm:$0xf]  ;;  %v1589_v8 = vld [vmem:[#allocation2 + $0xc4] sm:$0xf] }
  0xe0   : > { %780 = vst [vmem:[#allocation2 + $0xcc] sm:$0xff] %v772_v60 }
  0xe3   : > { %v524_v61 = vpop.permute.xlu1 %523  ;;  %v522_v62 = vpop.permute.xlu0 %521  ;;  %v1525_v13 = vld [vmem:[#allocation2 + $0x98] sm:$0xf] }
  0xe4   : > { %v530_v63 = vrot.slane %v524_v61, 4  ;;  %544 = vst.msk [vmem:[#allocation2 + $0x50] sm:$0xf] %vm543_vm14, %v524_v61  ;;  %v529_v0 = vrot.slane %v522_v62, 4  ;;  %v601_v1 = vpop.permute.xlu2 %600  ;;  %v1526_v20 = vor.u32 %v1585_v14, %v1525_v13 }
  0xe5   : > { %606 = vst.msk [vmem:[#allocation2 + $0x74] sm:$0xf] %vm604_vm15, %v601_v1 }
  0xe6   : > { %v533_v2 = vsel %vm438_vm1, %v529_v0, %v530_v63 }
  0xe7   : > { %v535_v6 = vsel %vm534_vm0, %v522_v62, %v533_v2  ;;  %v1590_v7 = vld [vmem:[#allocation2 + $0xc8] sm:$0xf0]  ;;  %v1543_v9 = vld [vmem:[#allocation2 + $0xcc] sm:$0xf0] }
  0xe8   : > { %542 = vst [vmem:[#allocation2 + $0x48] sm:$0xff] %v535_v6  ;;  %v1542_v10 = vor.u32 %v1590_v7, %v1541_v3  ;;  %v1546_v11 = vor.u32 %v1589_v8, %v1543_v9  ;;  %v1867_v8 = vmov 0  }
  0xe9   : > { %1679 = vset.pattern.permute.xlu0 %v1867_v8  ;;  %1680 = vset.pattern.permute.xlu1 %v1867_v8 }
  0xea   : > { %1011 = vmatpush.bf16.msra.mxu1 %v1542_v10  ;;  %1039 = vmatpush.bf16.msra.mxu3 %v1546_v11  ;;  %v1075_v10 = vld [vmem:[%s2326_s3 + $0x8] sm:$0xff]  ;;  %v1092_v11 = vld [vmem:[%s2327_s4] sm:$0xff] }
  0xeb   : > { %v646_v15 = vpop.permute.xlu1 %645  ;;  %v528_v16 = vpop.permute.xlu0 %527  ;;  %1078 = vperm.xlu0 %1679, %v1074_v5   ;;  %1681 = vset.pattern.permute.xlu2 %v1867_v8 }
  0xec   : > { %652 = vst.msk [vmem:[#allocation2 + $0x80] sm:$0xf] %vm651_vm12, %v646_v15  ;;  %v532_v18 = vrot.slane %v528_v16, 4  ;;  %v2160_v19 = vpop.permute.xlu2 %430  ;;  %v1579_v50 = vld [vmem:[#allocation2 + $0x70] sm:$0xf0]  ;;  %1083 = vperm.xlu1 %1680, %v1075_v10   ;;  %1096 = vperm.xlu2 %1681, %v1092_v11  }
  0xed   : > { %546 = vst.msk [vmem:[#allocation2 + $0x5c] sm:$0xf] %vm543_vm14, %v528_v16  ;;  %1552 = vmatmul.msk.bf16.vlgmr.msra.gmra.mxu3 %vm986_vm3, %v2172_v26  ;;  %1551 = vmatmul.msk.bf16.vlgmr.msra.gmra.mxu1 %vm986_vm3, %v2172_v26  ;;  %v436_v6 = vrot.slane %v2160_v19, 4 }
  0xee   : > { %1046 = vmatpush.bf16.msrb.mxu1 %v1538_v12  ;;  %v536_v21 = vsel %vm438_vm1, %v531_v17, %v532_v18  ;;  %v1093_v18 = vld [vmem:[%s2327_s4 + $0x8] sm:$0xff] }
  0xef   : > { %v537_v22 = vsel %vm534_vm0, %v2137_v36, %v536_v21  ;;  %v1481_v35 = vld [vmem:[#allocation2 + $0x48] sm:$0xf]  ;;  %v1574_v38 = vld [vmem:[#allocation2 + $0x4c] sm:$0xf] }
  0xf0   : > { %545 = vst [vmem:[#allocation2 + $0x54] sm:$0xff] %v537_v22  ;;  %v1566_v21 = vld [vmem:[#allocation2 + $0x8] sm:$0xf0] }
  0xf2   : > { %1047 = vmatpush.bf16.msrb.mxu1 %v1526_v20  ;;  %v1445_v20 = vld [vmem:[#allocation2] sm:$0xf] }
  0xf3   : > { %v477_v27 = vpop.permute.xlu1 %476  ;;  %v475_v28 = vpop.permute.xlu0 %474  ;;  %v1513_v29 = vld [vmem:[#allocation2 + $0x80] sm:$0xf] }
  0xf4   : > { %v483_v30 = vrot.slane %v477_v27, 4  ;;  %497 = vst.msk [vmem:[#allocation2 + $0x38] sm:$0xf] %vm496_vm2, %v477_v27  ;;  %v482_v31 = vrot.slane %v475_v28, 4  ;;  %v1514_v32 = vor.u32 %v1582_v25, %v1513_v29  ;;  %v554_v33 = vpop.permute.xlu2 %553  ;;  %1101 = vperm.xlu1 %1680, %v1093_v18  }
  0xf5   : > { %559 = vst.msk [vmem:[#allocation2 + $0x5c] sm:$0xf] %vm557_vm4, %v554_v33  ;;  %v1564_v33 = vld [vmem:[%s2325_s2 + $0x4] sm:$0xf0] }
  0xf6   : > { %v486_v34 = vsel %vm438_vm1, %v482_v31, %v483_v30  ;;  %1048 = vmatpush.bf16.msrb.mxu1 %v1514_v32  ;;  %v1446_v30 = vor.u32 %v1566_v21, %v1445_v20  ;;  %v1437_v32 = vld [vmem:[%s2325_s2] sm:$0xf] }
  0xf7   : > { %v488_v36 = vsel %vm487_vm5, %v475_v28, %v486_v34  ;;  %v1575_v37 = vld [vmem:[#allocation2 + $0x50] sm:$0xf0]  ;;  %v1483_v39 = vld [vmem:[#allocation2 + $0x54] sm:$0xf0] }
  0xf8   : > { %495 = vst [vmem:[#allocation2 + $0x30] sm:$0xff] %v488_v36  ;;  %v1482_v40 = vor.u32 %v1575_v37, %v1481_v35  ;;  %v1486_v41 = vor.u32 %v1574_v38, %v1483_v39  ;;  %v1438_v39 = vor.u32 %v1564_v33, %v1437_v32 }
  0xfa   : > { %994 = vmatpush.bf16.msra.mxu0 %v1482_v40  ;;  %1022 = vmatpush.bf16.msra.mxu2 %v1486_v41 }
  0xfb   : > { %v599_v42 = vpop.permute.xlu1 %598  ;;  %v481_v43 = vpop.permute.xlu0 %480 }
  0xfc   : > { %605 = vst.msk [vmem:[#allocation2 + $0x68] sm:$0xf] %vm604_vm15, %v599_v42  ;;  %v485_v45 = vrot.slane %v481_v43, 4  ;;  %v787_v46 = vpop.permute.xlu2 %786  ;;  %v1576_v13 = vld [vmem:[#allocation2 + $0x58] sm:$0xf0] }
  0xfd   : > { %499 = vst.msk [vmem:[#allocation2 + $0x44] sm:$0xf] %vm496_vm2, %v481_v43 }
  0xfe   : > { %v489_v47 = vsel %vm438_vm1, %v484_v44, %v485_v45  ;;  %793 = vst.msk [vmem:[#allocation2 + $0xc8] sm:$0xf] %vm792_vm6, %v787_v46  ;;  %v1453_v45 = vld [vmem:[#allocation2 + $0x8] sm:$0xf]  ;;  %v1567_v46 = vld [vmem:[#allocation2 + $0x10] sm:$0xf0] }
  0xff   : > { %v490_v48 = vsel %vm487_vm5, %v2148_v58, %v489_v47  ;;  %v1469_v60 = vld [vmem:[#allocation2 + $0x30] sm:$0xf]  ;;  %v1571_v62 = vld [vmem:[#allocation2 + $0x34] sm:$0xf] }
 0x100   : > { %498 = vst [vmem:[#allocation2 + $0x3c] sm:$0xff] %v490_v48  ;;  %v1454_v48 = vor.u32 %v1567_v46, %v1453_v45 }
 0x103   : > { %v429_v52 = vpop.permute.xlu1 %428  ;;  %v427_v53 = vpop.permute.xlu0 %426  ;;  %v1501_v54 = vld [vmem:[#allocation2 + $0x68] sm:$0xf] }
 0x104   : > { %v435_v55 = vrot.slane %v429_v52, 4  ;;  %450 = vst.msk [vmem:[#allocation2 + $0x20] sm:$0xf] %vm449_vm7, %v429_v52  ;;  %v434_v56 = vrot.slane %v427_v53, 4  ;;  %v1502_v57 = vor.u32 %v1579_v50, %v1501_v54  ;;  %v460_v2 = vpop.permute.xlu2 %459 }
 0x105   : > { %v1549_v41 = vld [vmem:[#allocation2 + $0xc8] sm:$0xf] }
 0x106   : > { %v439_v59 = vsel %vm438_vm1, %v434_v56, %v435_v55  ;;  %1049 = vmatpush.bf16.msrb.mxu1 %v1502_v57 }
 0x107   : > { %v441_v58 = vsel %vm440_vm8, %v427_v53, %v439_v59  ;;  %v1572_v61 = vld [vmem:[#allocation2 + $0x38] sm:$0xf0]  ;;  %v1471_v63 = vld [vmem:[#allocation2 + $0x3c] sm:$0xf0] }
 0x108   : > { %448 = vst [vmem:[#allocation2 + $0x18] sm:$0xff] %v441_v58  ;;  %v1470_v0 = vor.u32 %v1572_v61, %v1469_v60  ;;  %v1474_v1 = vor.u32 %v1571_v62, %v1471_v63 }
 0x10a   : > { %995 = vmatpush.bf16.msra.mxu0 %v1470_v0  ;;  %1023 = vmatpush.bf16.msra.mxu2 %v1474_v1 }
 0x10b   : > { %v552_v3 = vpop.permute.xlu1 %551  ;;  %v433_v4 = vpop.permute.xlu0 %432 }
 0x10c   : > { %558 = vst.msk [vmem:[#allocation2 + $0x50] sm:$0xf] %vm557_vm4, %v552_v3  ;;  %v437_v7 = vrot.slane %v433_v4, 4 }
 0x10d   : > { %452 = vst.msk [vmem:[#allocation2 + $0x2c] sm:$0xf] %vm449_vm7, %v433_v4 }
 0x10e   : > { %v442_v9 = vsel %vm438_vm1, %v436_v6, %v437_v7  ;;  %465 = vst.msk [vmem:[#allocation2 + $0x2c] sm:$0xf] %vm463_vm9, %v460_v2 }
 0x10f   : > { %v443_v12 = vsel %vm440_vm8, %v2160_v19, %v442_v9  ;;  %v1457_v22 = vld [vmem:[#allocation2 + $0x18] sm:$0xf]  ;;  %v1565_v19 = vld [vmem:[#allocation2 + $0x4] sm:$0xf]  ;;  %v1568_v25 = vld [vmem:[#allocation2 + $0x1c] sm:$0xf] }
 0x110   : > { %451 = vst [vmem:[#allocation2 + $0x24] sm:$0xff] %v443_v12  ;;  %v1450_v31 = vor.u32 %v1565_v19, %v1447_v23 }
 0x113   : > { %v507_v14 = vpop.permute.xlu1 %506  ;;  %v505_v15 = vpop.permute.xlu0 %504  ;;  %v1489_v16 = vld [vmem:[#allocation2 + $0x50] sm:$0xf] }
 0x114   : > { %512 = vst.msk [vmem:[#allocation2 + $0x44] sm:$0xf] %vm510_vm10, %v507_v14  ;;  %v1490_v17 = vor.u32 %v1576_v13, %v1489_v16 }
 0x115   : > { %511 = vst.msk [vmem:[#allocation2 + $0x38] sm:$0xf] %vm510_vm10, %v505_v15  ;;  %v1570_v40 = vld [vmem:[#allocation2 + $0x28] sm:$0xf0] }
 0x116   : > { %1050 = vmatpush.bf16.msrb.mxu1 %v1490_v17 }
 0x117   : > { %v1569_v24 = vld [vmem:[#allocation2 + $0x20] sm:$0xf0]  ;;  %v1459_v27 = vld [vmem:[#allocation2 + $0x24] sm:$0xf0] }
 0x118   : > { %v1458_v28 = vor.u32 %v1569_v24, %v1457_v22  ;;  %v1462_v29 = vor.u32 %v1568_v25, %v1459_v27 }
 0x11a   : > { %996 = vmatpush.bf16.msra.mxu0 %v1458_v28  ;;  %1024 = vmatpush.bf16.msra.mxu2 %v1462_v29 }
 0x11b   : > { %v789_v34 = vpop.permute.xlu0 %788  ;;  %v458_v35 = vpop.permute.xlu1 %457  ;;  %v1573_v36 = vld [vmem:[#allocation2 + $0x40] sm:$0xf0] }
 0x11c   : > { %794 = vst.msk [vmem:[#allocation2 + $0xd4] sm:$0xf] %vm792_vm6, %v789_v34  ;;  %v1477_v37 = vld [vmem:[#allocation2 + $0x38] sm:$0xf] }
 0x11d   : > { %464 = vst.msk [vmem:[#allocation2 + $0x20] sm:$0xf] %vm463_vm9, %v458_v35  ;;  %v1478_v38 = vor.u32 %v1573_v36, %v1477_v37 }
 0x11e   : > { %997 = vmatpush.bf16.msra.mxu0 %v1446_v30  ;;  %1025 = vmatpush.bf16.msra.mxu2 %v1450_v31 }
 0x11f   : > { %1051 = vmatpush.bf16.msrb.mxu1 %v1478_v38 }
 0x121   : > { %998 = vmatmul.bf16.vlgmr.msra.gmra.mxu0 %v1438_v39  ;;  %1026 = vmatmul.bf16.vlgmr.msra.gmra.mxu2 %v1438_v39 }
 0x123   : > { %v1591_v42 = vld [vmem:[#allocation2 + $0xd0] sm:$0xf0] }
 0x124   : > { %v1550_v43 = vor.u32 %v1591_v42, %v1549_v41  ;;  %v1465_v44 = vld [vmem:[#allocation2 + $0x20] sm:$0xf] }
 0x125   : > { %v1466_v47 = vor.u32 %v1570_v40, %v1465_v44 }
 0x126   : > { %1067 = vmatpush.bf16.msrb.mxu3 %v1550_v43 }
 0x127   : > { %1052 = vmatpush.bf16.msrb.mxu1 %v1466_v47 }
 0x129   : > { %1553 = vmatmul.msk.bf16.vlgmr.msrb.gmra.mxu3 %vm986_vm3, %v2172_v26 }
 0x12b   : > { %1053 = vmatpush.bf16.msrb.mxu1 %v1454_v48 }
 0x12e   : > { %1054 = vmatmul.bf16.vlgmr.msrb.gmra.mxu1 %v1438_v39 }
 0x146   : > { %v1097_v55 = vpop.permute.xlu2 %1096 }
 0x15d   : > { %v1079_v51 = vpop.permute.xlu0 %1078 }
 0x15e   : > { %v1084_v53 = vpop.permute.xlu1 %1083 }
 0x166   : > { %v1102_v1 = vpop.permute.xlu1 %1101 }
 0x16a   : > { %v1013_v49 = vpop.f32.mrf.mxu1 }
 0x170   : > { %v1041_v50 = vpop.f32.mrf.mxu3 }
 0x172   : > { %v1015_v59 = vpop.f32.mrf.mxu1 }
 0x178   : > { %v1043_v58 = vpop.f32.mrf.mxu3 }
 0x19e   : > { %v999_v52 = vpop.f32.mrf.mxu0 }
 0x19f   : > { %v1014_v54 = vadd.f32 %v1013_v49, %v999_v52 }
 0x1a1   : > { %v1086_v56 = vmul.f32 %v1079_v51, %v1014_v54 }
 0x1a3   : > { %v2223_v57 = vadd.f32 %v1097_v55, %v1086_v56 }
 0x1a4   : > { %v1027_v60 = vpop.f32.mrf.mxu2 }
 0x1a5   : > { %v1554_v61 = vmul.f32 -1.442695, %v2223_v57  ;;  %v1042_v62 = vadd.f32 %v1041_v50, %v1027_v60 }
 0x1a6   : > { %v1001_v63 = vpop.f32.mrf.mxu0 }
 0x1a7   : > { %1682 = vpow2.f32 %v1554_v61  ;;  %v1087_v26 = vmul.f32 %v1079_v51, %v1042_v62  ;;  %v1016_v0 = vadd.f32 %v1015_v59, %v1001_v63 }
 0x1a9   : > { %v2226_v2 = vadd.f32 %v1097_v55, %v1087_v26  ;;  %v1089_v3 = vmul.f32 %v1084_v53, %v1016_v0 }
 0x1ab   : > { %v1555_v4 = vmul.f32 -1.442695, %v2226_v2  ;;  %v2229_v5 = vadd.f32 %v1102_v1, %v1089_v3  ;;  %v1055_v6 = vpop.f32.mrf.mxu1 }
 0x1ac   : > { %v1029_v7 = vpop.f32.mrf.mxu2  ;;  %v1069_v8 = vpop.f32.mrf.mxu3 }
 0x1ad   : > { %v1683_v9 = vpop.eup %1682  ;;  %1684 = vpow2.f32 %v1555_v4  ;;  %v1557_v10 = vmul.f32 -1.442695, %v2229_v5  ;;  %v1044_v11 = vadd.f32 %v1043_v58, %v1029_v7  ;;  %v1070_v12 = vadd.f32 %v1069_v8, %v1055_v6 }
 0x1ae   : > { %v1128_v13 = vadd.f32 1.0, %v1683_v9 }
 0x1af   : > { %1686 = vpow2.f32 %v1557_v10  ;;  %v1090_v14 = vmul.f32 %v1084_v53, %v1044_v11  ;;  %v1088_v15 = vmul.f32 %v1079_v51, %v1070_v12 }
 0x1b0   : > { %1688 = vrcp.f32 %v1128_v13  ;;  %vm1139_vm11 = vweird.f32 %v1128_v13  ;;  %v1143_v41 = vand.u32 2147483647, %v1128_v13  ;;  %v1145_v42 = vand.u32 2147483648, %v1128_v13 }
 0x1b1   : > { %v2232_v16 = vadd.f32 %v1102_v1, %v1090_v14  ;;  %v2234_v17 = vadd.f32 %v1097_v55, %v1088_v15 }
 0x1b2   : > { %v1146_v51 = vor.u32 1.1754944e-38, %v1145_v42  ;;  %vm1144_vm14 = vcmp.eq.f32.partialorder %v1143_v41, 8.507059e+37 }
 0x1b3   : > { %v1685_v18 = vpop.eup %1684  ;;  %v1558_v20 = vmul.f32 -1.442695, %v2232_v16  ;;  %v1556_v21 = vmul.f32 -1.442695, %v2234_v17  ;;  %v1057_v19 = vpop.f32.mrf.mxu1 }
 0x1b4   : > { %v1129_v22 = vadd.f32 1.0, %v1685_v18  ;;  %v1071_v23 = vpop.f32.mrf.mxu3 }
 0x1b5   : > { %v1687_v24 = vpop.eup %1686  ;;  %1690 = vpow2.f32 %v1558_v20  ;;  %v1072_v25 = vadd.f32 %v1071_v23, %v1057_v19 }
 0x1b6   : > { %v1689_v27 = vpop.eup %1688  ;;  %1692 = vrcp.f32 %v1129_v22  ;;  %v2238_v29 = vadd.f32 1.0, %v1687_v24  ;;  %v1158_v45 = vand.u32 2147483647, %v1129_v22  ;;  %v1160_v47 = vand.u32 2147483648, %v1129_v22 }
 0x1b7   : > { %v1135_v28 = vmul.f32 %v1689_v27, %v1128_v13  ;;  %1694 = vpow2.f32 %v1556_v21  ;;  %v1091_v30 = vmul.f32 %v1084_v53, %v1072_v25  ;;  %vm1140_vm1 = vweird.f32 %v1689_v27 }
 0x1b8   : > { %1696 = vrcp.f32 %v2238_v29  ;;  %vm1141_vm12 = vmor %vm1139_vm11, %vm1140_vm1  ;;  %vm1154_vm15 = vweird.f32 %v1129_v22  ;;  %vm1159_vm0 = vcmp.eq.f32.partialorder %v1158_v45, 8.507059e+37  ;;  %v1161_v56 = vor.u32 1.1754944e-38, %v1160_v47 }
 0x1b9   : > { %v1136_v31 = vsub.f32 1.0, %v1135_v28  ;;  %v2241_v32 = vadd.f32 %v1102_v1, %v1091_v30  ;;  %vm1184_vm3 = vweird.f32 %v2238_v29  ;;  %v1188_v61 = vand.u32 2147483647, %v2238_v29 }
 0x1ba   : > { %v1190_v0 = vand.u32 2147483648, %v2238_v29 }
 0x1bb   : > { %v1691_v33 = vpop.eup %1690  ;;  %v1137_v34 = vmul.f32 %v1689_v27, %v1136_v31  ;;  %v1559_v37 = vmul.f32 -1.442695, %v2241_v32  ;;  %vm1189_vm7 = vcmp.eq.f32.partialorder %v1188_v61, 8.507059e+37 }
 0x1bc   : > { %v1693_v35 = vpop.eup %1692  ;;  %v2243_v36 = vadd.f32 1.0, %v1691_v33 }
 0x1bd   : > { %v1695_v38 = vpop.eup %1694  ;;  %v1138_v39 = vadd.f32 %v1689_v27, %v1137_v34  ;;  %v1150_v40 = vmul.f32 %v1693_v35, %v1129_v22  ;;  %vm1155_vm13 = vweird.f32 %v1693_v35 }
 0x1be   : > { %1698 = vrcp.f32 %v2243_v36  ;;  %v1697_v43 = vpop.eup %1696  ;;  %v2247_v46 = vadd.f32 1.0, %v1695_v38  ;;  %vm1156_vm2 = vmor %vm1154_vm15, %vm1155_vm13  ;;  %v1205_v8 = vand.u32 2147483648, %v2243_v36  ;;  %v1203_v10 = vand.u32 2147483647, %v2243_v36 }
 0x1bf   : > { %v1151_v44 = vsub.f32 1.0, %v1150_v40  ;;  %1700 = vpow2.f32 %v1559_v37  ;;  %v1180_v48 = vmul.f32 %v1697_v43, %v2238_v29  ;;  %v1142_v49 = vsel %vm1141_vm12, %v1689_v27, %v1138_v39 }
 0x1c0   : > { %1702 = vrcp.f32 %v2247_v46  ;;  %v1147_v55 = vsel %vm1144_vm14, %v1146_v51, %v1142_v49  ;;  %vm1185_vm4 = vweird.f32 %v1697_v43  ;;  %vm1199_vm8 = vweird.f32 %v2243_v36 }
 0x1c1   : > { %v1152_v50 = vmul.f32 %v1693_v35, %v1151_v44  ;;  %v1181_v52 = vsub.f32 1.0, %v1180_v48  ;;  %v1224_v4 = vmul.f32 %v1147_v55, %v2223_v57  ;;  %vm2260_vm5 = vmor %vm1184_vm3, %vm1185_vm4  ;;  %v1206_v18 = vor.u32 1.1754944e-38, %v1205_v8 }
 0x1c2   : > { %v1175_v20 = vand.u32 2147483648, %v2247_v46  ;;  %v1173_v19 = vand.u32 2147483647, %v2247_v46  ;;  %vm1204_vm1 = vcmp.eq.f32.partialorder %v1203_v10, 8.507059e+37  ;;  %vm1169_vm11 = vweird.f32 %v2247_v46 }
 0x1c3   : > { %v1153_v53 = vadd.f32 %v1693_v35, %v1152_v50  ;;  %v1182_v59 = vmul.f32 %v1697_v43, %v1181_v52 }
 0x1c4   : > { %v1699_v54 = vpop.eup %1698  ;;  %v1176_v30 = vor.u32 1.1754944e-38, %v1175_v20  ;;  %vm1174_vm13 = vcmp.eq.f32.partialorder %v1173_v19, 8.507059e+37 }
 0x1c5   : > { %v1701_v60 = vpop.eup %1700  ;;  %v1157_v58 = vsel %vm1156_vm2, %v1693_v35, %v1153_v53  ;;  %v1195_v62 = vmul.f32 %v1699_v54, %v2243_v36  ;;  %v1183_v26 = vadd.f32 %v1697_v43, %v1182_v59  ;;  %vm1200_vm6 = vweird.f32 %v1699_v54 }
 0x1c6   : > { %v1162_v63 = vsel %vm1159_vm0, %v1161_v56, %v1157_v58  ;;  %v1133_v1 = vadd.f32 1.0, %v1701_v60  ;;  %v1703_v3 = vpop.eup %1702  ;;  %vm1201_vm9 = vmor %vm1199_vm8, %vm1200_vm6 }
 0x1c7   : > { %v1225_v6 = vmul.f32 %v1162_v63, %v2226_v2  ;;  %v1196_v7 = vsub.f32 1.0, %v1195_v62  ;;  %v1165_v11 = vmul.f32 %v1703_v3, %v2247_v46  ;;  %v1187_v57 = vsel %vm2260_vm5, %v1697_v43, %v1183_v26 }
 0x1c8   : > { %1704 = vrcp.f32 %v1133_v1  ;;  %v1191_v2 = vor.u32 1.1754944e-38, %v1190_v0  ;;  %vm1170_vm10 = vweird.f32 %v1703_v3  ;;  %v1220_v38 = vand.u32 2147483648, %v1133_v1 }
 0x1c9   : > { %v1230_v12 = vpack.c.bf16 %v1225_v6, %v1224_v4  ;;  %v1197_v13 = vmul.f32 %v1699_v54, %v1196_v7  ;;  %v1166_v14 = vsub.f32 1.0, %v1165_v11  ;;  %vm1171_vm12 = vmor %vm1169_vm11, %vm1170_vm10  ;;  %vm1214_vm15 = vweird.f32 %v1133_v1 }
 0x1ca   : > { %v1192_v21 = vsel %vm1189_vm7, %v1191_v2, %v1187_v57  ;;  %v1221_v41 = vor.u32 1.1754944e-38, %v1220_v38 }
 0x1cb   : > { %1234 = vst [vmem:[%s2270_s25] sm:$0xff] %v1230_v12  ;;  %v1198_v15 = vadd.f32 %v1699_v54, %v1197_v13  ;;  %v1167_v22 = vmul.f32 %v1703_v3, %v1166_v14  ;;  %v1227_v28 = vmul.f32 %v1192_v21, %v2229_v5  ;;  %v1218_v5 = vand.u32 2147483647, %v1133_v1 }
 0x1cd   : > { %v1202_v23 = vsel %vm1201_vm9, %v1699_v54, %v1198_v15  ;;  %v1168_v27 = vadd.f32 %v1703_v3, %v1167_v22  ;;  %vm1219_vm2 = vcmp.eq.f32.partialorder %v1218_v5, 8.507059e+37 }
 0x1ce   : > { %v1705_v24 = vpop.eup %1704  ;;  %v1207_v25 = vsel %vm1204_vm1, %v1206_v18, %v1202_v23 }
 0x1cf   : > { %v1228_v29 = vmul.f32 %v1207_v25, %v2232_v16  ;;  %v1210_v31 = vmul.f32 %v1705_v24, %v1133_v1  ;;  %v1172_v33 = vsel %vm1171_vm12, %v1703_v3, %v1168_v27  ;;  %vm1215_vm14 = vweird.f32 %v1705_v24 }
 0x1d0   : > { %v1177_v35 = vsel %vm1174_vm13, %v1176_v30, %v1172_v33  ;;  %vm1216_vm0 = vmor %vm1214_vm15, %vm1215_vm14 }
 0x1d1   : > { %v1232_v34 = vpack.c.bf16 %v1228_v29, %v1227_v28  ;;  %v1211_v36 = vsub.f32 1.0, %v1210_v31  ;;  %v1226_v37 = vmul.f32 %v1177_v35, %v2234_v17 }
 0x1d3   : > { %1236 = vst [vmem:[%s2270_s25 + $0xc] sm:$0xff] %v1232_v34  ;;  %v1212_v39 = vmul.f32 %v1705_v24, %v1211_v36  ;;  %v1231_v40 = vpack.c.bf16 %v1226_v37, %v1226_v37 }
 0x1d5   : > { %v1213_v16 = vadd.f32 %v1705_v24, %v1212_v39  ;;  %1235 = vst [vmem:[%s2270_s25 + $0x8] sm:$0xf] %v1231_v40 }
 0x1d7   : > { %v1217_v42 = vsel %vm1216_vm0, %v1705_v24, %v1213_v16 }
 0x1d8   : > { %v1222_v17 = vsel %vm1219_vm2, %v1221_v41, %v1217_v42 }
 0x1d9   : > { %v1229_v43 = vmul.f32 %v1222_v17, %v2241_v32 }
 0x1db   : > { %v1233_v44 = vpack.c.bf16 %v1229_v43, %v1229_v43 }
 0x1dd   : > { %1237 = vst [vmem:[%s2270_s25 + $0x14] sm:$0xf] %v1233_v44 }
 0x1de   : > { %1793 = shalt.err (!%p1790_p13)
}
 0x1df   : > { %s1868_s26 = smov 192   ;;  %s1869_s22 = smov 12  }
 0x1e0   : > { %1600 = dma.vmem_to_hbm [thread:$0]  (%p1951_p9), %s1257_s21, 384, %s1259_s13, %s1239_s14, %s1868_s26, %s1868_s26, %s1869_s22  }
 0x1e1 PF: > { %s1273_s30 = sand.u32 1, %s1832_s18   ;;  %p1610_p0 = pnand %p1429_p12, %p1958_p11 }
 0x1e2   : > { %s1274_s8 = scalar_lea.sflag [#allocation5], %s1273_s30 }
 0x1e3   : > { %p1611_p1 = pneg %p1610_p0 }
 0x1e5   : > { %1827 = dma.done.wait (%p1611_p1), %s1274_s8, 384  }
 0x1e6   : > { %1829 = vsyncadd (%p1611_p1), %s1274_s8, 4294966912  ;;  %s24_s23 = sadd.s32 1, %s1852_s23   ;;  %s2348_s9 = sld [smem:[#allocation12_spill]] }
 0x1e7   : > { %p21_p2 = scmp.ge.s32.totalorder %s24_s23, 4   ;;  %s2349_s20 = sld [smem:[#allocation15_spill]] }
 0x1e8   : > { %s2350_s21 = sld [smem:[#allocation13_spill]]  ;;  %s2352_s18 = smov %s1836_s19 }
 0x1e9   : > { %s2351_s22 = sld [smem:[#allocation14_spill]]  ;;  %23 = sbr.rel (!%p21_p2) target bundleno = 10 (0xa), region = 107 }
 0x1ec   : > { %s2353_s19 = smov %s2348_s9 }
 0x1ee   :  { %1280 = vsyncpa [#allocation4], 1 }
 0x1ef   :  { %1282 = vsyncpa [#allocation4 + $0x1], 1 }
 0x1f0   :  { %1283 = vsyncpa [#allocation7], 1 }
 0x1f1   :  { %1285 = vsyncpa [#allocation7 + $0x1], 1 }
 0x1f2   :  { %1286 = vsyncpa [#allocation5], 1 }
 0x1f3   :  { %1288 = vsyncpa [#allocation5 + $0x1], 1 }

</bundles_post_ra>
